<compile_context>
chip_gen: v7x
topology: tpu7x:2x2x1
jax: 0.10.0
libtpu: 0.0.40
codegen_flags: <defaults>
</compile_context>

<pallas_src>
import functools

import numpy as np
import jax
import jax.numpy as jnp
from jax import lax
from jax.experimental import pallas as pl
from jax.experimental.pallas import tpu as pltpu


# ------------------------------ Pallas kernel ------------------------------- #

def _dense_block2_kernel(x_ref, masks_ref, dw_ref, pw_ref, o_ref, *, W, Nb):
    """Fused DenseBlock2 for Nb batch elements.

    x_ref   : (Nb, C, HW)      channel-major, spatially flattened input
    masks   : (9, HW)          0/1 edge-validity mask per 3x3 tap
    dw_ref  : (2C+Ch, 10)      rows [0:C]=unit1, [C:2C+Ch]=unit2 (BN folded);
                               cols 0..8 = taps, col 9 = folded BN bias
    pw_ref  : (Ch, 2C+Ch+2)    cols [0:C]=pw_w1, [C]=pw_b1,
                               [C+1:2C+Ch+1]=pw_w2, [2C+Ch+1]=pw_b2
    o_ref   : (Nb, 2C, HW)     [x | out1 | out2]
    """
    C = x_ref.shape[1]
    Ch = C // 2
    HW = x_ref.shape[2]

    x = x_ref[...].astype(jnp.float32)                 # (Nb, C, HW)
    masks = masks_ref[...].astype(jnp.float32)         # (9, HW)
    dw = dw_ref[...].astype(jnp.float32)               # (2C+Ch, 10)
    pw = pw_ref[...].astype(jnp.float32)               # (Ch, 2C+Ch+2)

    offsets = [(dy - 1) * W + (dx - 1) for dy in range(3) for dx in range(3)]

    def shifted_taps(v):
        # v: (Nb, Cv, HW) -> list of 9 masked, lane-shifted copies (Nb, Cv, HW)
        Cv = v.shape[1]
        flat = v.reshape(Nb * Cv, HW)                  # free reshape (lane dim kept)
        taps = []
        for t, off in enumerate(offsets):
            if off == 0:                               # center tap: mask all-ones
                taps.append(v)
            else:
                s = pltpu.roll(flat, (-off) % HW, 1)   # cyclic lane shift (XLU)
                s = s * masks[t:t + 1, :]              # zero wrapped border taps
                taps.append(s.reshape(Nb, Cv, HW))
        return taps

    def depthwise(taps, row0, Cv):
        # taps: 9 x (Nb, Cv, HW); weights/bias from dw rows [row0:row0+Cv]
        acc = None
        for t in range(9):
            w_t = dw[row0:row0 + Cv, t:t + 1].reshape(1, Cv, 1)
            term = taps[t] * w_t
            acc = term if acc is None else acc + term
        b = dw[row0:row0 + Cv, 9:10].reshape(1, Cv, 1)
        return jnp.maximum(acc + b, 0.0)

    def matmul_batched(w, h):
        # w: (Cout, Cin), h: (Nb, Cin, HW) -> (Nb, Cout, HW); Nb is static & small
        outs = [jnp.dot(w, h[n], preferred_element_type=jnp.float32)[None]
                for n in range(Nb)]
        return outs[0] if Nb == 1 else jnp.concatenate(outs, axis=0)

    # ----- mobile unit 1: x -> out1 -----
    taps_x = shifted_taps(x)
    h1 = depthwise(taps_x, 0, C)
    pw_w1 = pw[:, 0:C]
    pw_b1 = pw[:, C:C + 1].reshape(1, Ch, 1)
    out1 = jnp.maximum(matmul_batched(pw_w1, h1) + pw_b1, 0.0)     # (Nb, Ch, HW)

    # ----- mobile unit 2 on comb1 = [x | out1]; reuse the 9 x-taps -----
    taps_o1 = shifted_taps(out1)
    h2_x = depthwise(taps_x, C, C)                  # dw2 rows for the x channels
    h2_o1 = depthwise(taps_o1, 2 * C, Ch)           # dw2 rows for the out1 channels
    pw_w2_x = pw[:, C + 1:C + 1 + C]
    pw_w2_o1 = pw[:, C + 1 + C:C + 1 + C + Ch]
    pw_b2 = pw[:, 2 * C + Ch + 1:2 * C + Ch + 2].reshape(1, Ch, 1)
    out2 = jnp.maximum(matmul_batched(pw_w2_x, h2_x)
                       + matmul_batched(pw_w2_o1, h2_o1) + pw_b2, 0.0)

    # One aligned, unmasked full-block store (no partial stores / read-back).
    comb2 = jnp.concatenate([x, out1, out2], axis=1)                # (Nb, 2C, HW)
    o_ref[...] = comb2.astype(o_ref.dtype)


def _make_tap_masks(H, W):
    """(9, H*W) 0/1 mask: tap (dy,dx) valid iff (h+dy-1, w+dx-1) is in range."""
    m = np.ones((3, 3, H, W), np.float32)
    m[0, :, 0, :] = 0.0        # dy=0 needs h >= 1
    m[2, :, H - 1, :] = 0.0    # dy=2 needs h <= H-2
    m[:, 0, :, 0] = 0.0        # dx=0 needs w >= 1
    m[:, 2, :, W - 1] = 0.0    # dx=2 needs w <= W-2
    return m.reshape(9, H * W)


def dense_block2_pallas(x_nchw, params):
    """DenseBlock2.forward. x: (N, C, H, W) -> (N, 2C, H, W). One pallas_call."""
    N, C, H, W = x_nchw.shape
    Ch = C // 2
    HW = H * W
    (dw_w1, dw_b1, pw_w1, pw_b1), (dw_w2, dw_b2, pw_w2, pw_b2) = params

    # Channel-major, spatially flattened (pure reshape — no transpose needed).
    x_flat = x_nchw.reshape(N, C, HW)
    masks = jnp.asarray(_make_tap_masks(H, W))

    # Pack the 8 tiny weight/bias operands into 2 arrays.
    dw_pack = jnp.concatenate(
        [jnp.concatenate([dw_w1, dw_b1], axis=1),      # (C,      10)
         jnp.concatenate([dw_w2, dw_b2], axis=1)],     # (C + Ch, 10)
        axis=0)                                        # (2C+Ch,  10)
    pw_pack = jnp.concatenate([pw_w1, pw_b1, pw_w2, pw_b2], axis=1)  # (Ch, 2C+Ch+2)

    # Elements per grid step: amortize per-step overhead, keep >=2 steps when
    # N >= 2 (v7x has 2 TensorCores), cap per-step VMEM (sized for v7x 64 MiB).
    bytes_per_elem = (12 * C + 11 * Ch) * HW * 4       # x + taps + out1 + taps_o1 + out (f32)
    vmem_budget = 8 * 1024 * 1024
    max_nb = max(1, vmem_budget // max(bytes_per_elem, 1))
    target_steps = 2 if N >= 2 else 1
    nb = max(1, min(int(max_nb), N // target_steps))
    while N % nb:                                      # need an exact divisor of N
        nb -= 1
    n_steps = N // nb

    kernel = functools.partial(_dense_block2_kernel, W=W, Nb=nb)

    def const_spec(arr):
        return pl.BlockSpec(arr.shape, lambda n: (0,) * arr.ndim)

    # TODO(synk): for large H*W (beyond VMEM), tile the spatial axis over the
    # grid with a 1-row halo; size those tiles against v7x's 64 MiB VMEM.
    # TODO(synk): if the surrounding model is bf16, keep HBM I/O in bf16 and
    # upcast inside the kernel (the accumulation path is already f32).
    out = pl.pallas_call(
        kernel,
        out_shape=jax.ShapeDtypeStruct((N, 2 * C, HW), x_nchw.dtype),
        grid_spec=pltpu.PrefetchScalarGridSpec(
            num_scalar_prefetch=0,
            grid=(n_steps,),
            in_specs=[
                pl.BlockSpec((nb, C, HW), lambda n: (n, 0, 0)),
                const_spec(masks),
                const_spec(dw_pack),
                const_spec(pw_pack),
            ],
            out_specs=pl.BlockSpec((nb, 2 * C, HW), lambda n: (n, 0, 0)),
        ),
        compiler_params=pltpu.CompilerParams(
            dimension_semantics=("parallel",),         # batch steps independent
            vmem_limit_bytes=32 * 1024 * 1024,
        ),
    )(x_flat, masks, dw_pack, pw_pack)

    return out.reshape(N, 2 * C, H, W)


# ------------------------ parameters (deterministic) ------------------------ #

def make_mobile_unit_params(key, c_in, c_out):
    ks = jax.random.split(key, 10)
    eps = 1e-5

    dw_w = 0.2 * jax.random.normal(ks[0], (c_in, 3, 3), jnp.float32)
    pw_w = jax.random.normal(ks[1], (c_out, c_in), jnp.float32) / np.sqrt(c_in)

    # BN after depthwise conv (eval mode).
    g1 = 1.0 + 0.1 * jax.random.normal(ks[2], (c_in,), jnp.float32)
    b1 = 0.1 * jax.random.normal(ks[3], (c_in,), jnp.float32)
    m1 = 0.05 * jax.random.normal(ks[4], (c_in,), jnp.float32)
    v1 = 1.0 + 0.1 * jax.random.uniform(ks[5], (c_in,), jnp.float32)
    s1 = g1 / jnp.sqrt(v1 + eps)

    # BN after pointwise conv (eval mode).
    g2 = 1.0 + 0.1 * jax.random.normal(ks[6], (c_out,), jnp.float32)
    b2 = 0.1 * jax.random.normal(ks[7], (c_out,), jnp.float32)
    m2 = 0.05 * jax.random.normal(ks[8], (c_out,), jnp.float32)
    v2 = 1.0 + 0.1 * jax.random.uniform(ks[9], (c_out,), jnp.float32)
    s2 = g2 / jnp.sqrt(v2 + eps)

    # Fold BN scales into the conv weights (exact); keep only the biases.
    dw_w_f = (dw_w * s1[:, None, None]).reshape(c_in, 9)
    dw_b = (b1 - m1 * s1).reshape(c_in, 1)
    pw_w_f = pw_w * s2[:, None]
    pw_b = (b2 - m2 * s2).reshape(c_out, 1)
    return (dw_w_f, dw_b, pw_w_f, pw_b)


def make_dense_block2_params(key, channel_in):
    ch = channel_in // 2
    k1, k2 = jax.random.split(key)
    return (make_mobile_unit_params(k1, channel_in, ch),
            make_mobile_unit_params(k2, channel_in * 3 // 2, ch))


# --------------------------- pure-JAX reference ------------------------------ #

def _mobile_unit_ref(x_nchw, params):
    dw_w, dw_b, pw_w, pw_b = params
    cin = x_nchw.shape[1]
    w = dw_w.reshape(cin, 1, 3, 3)
    h = lax.conv_general_dilated(
        x_nchw, w, (1, 1), "SAME",
        dimension_numbers=("NCHW", "OIHW", "NCHW"),
        feature_group_count=cin)
    h = jnp.maximum(h + dw_b.reshape(1, cin, 1, 1), 0.0)
    out = jnp.einsum("oc,nchw->nohw", pw_w, h)
    out = jnp.maximum(out + pw_b.reshape(1, -1, 1, 1), 0.0)
    return out


def dense_block2_ref(x_nchw, params):
    p1, p2 = params
    out1 = _mobile_unit_ref(x_nchw, p1)
    comb1 = jnp.concatenate([x_nchw, out1], axis=1)
    out2 = _mobile_unit_ref(comb1, p2)
    return jnp.concatenate([comb1, out2], axis=1)


# ---------------------------------- main ------------------------------------- #

if __name__ == "__main__":
    key = jax.random.PRNGKey(0)
    k_x, k_p = jax.random.split(key)

    N, C, H, W = 2, 8, 16, 16            # channel_in even; H*W multiple of 128
    x = jax.random.normal(k_x, (N, C, H, W), jnp.float32)
    params = make_dense_block2_params(k_p, C)

    out = jax.block_until_ready(dense_block2_pallas(x, params))
    assert out.shape == (N, 2 * C, H, W), (out.shape, (N, 2 * C, H, W))

    ref = jax.block_until_ready(dense_block2_ref(x, params))
    np.testing.assert_allclose(np.asarray(out), np.asarray(ref), rtol=2e-3, atol=2e-3)

    print("KERNEL_OK")
</pallas_src>

<mosaic_0001>
module attributes {stable_mosaic.version = 11 : i64} {
  func.func @_dense_block2_kernel(%arg0: i32, %arg1: memref<1x8x256xf32, #tpu.memory_space<vmem>>, %arg2: memref<9x256xf32, #tpu.memory_space<vmem>>, %arg3: memref<20x10xf32, #tpu.memory_space<vmem>>, %arg4: memref<4x22xf32, #tpu.memory_space<vmem>>, %arg5: memref<1x16x256xf32, #tpu.memory_space<vmem>>) attributes {dimension_semantics = [#tpu.dimension_semantics<parallel>], iteration_bounds = array<i64: 2>, scalar_prefetch = 0 : i64, scratch_operands = 0 : i64, tpu.core_type = #tpu.core_type<tc>, window_params = [{transform_indices = @transform_0, window_bounds = array<i64: 1, 8, 256>}, {pipeline_mode = #tpu.pipeline_mode<synchronous>, transform_indices = @transform_1, window_bounds = array<i64: 9, 256>}, {pipeline_mode = #tpu.pipeline_mode<synchronous>, transform_indices = @transform_2, window_bounds = array<i64: 20, 10>}, {pipeline_mode = #tpu.pipeline_mode<synchronous>, transform_indices = @transform_3, window_bounds = array<i64: 4, 22>}, {transform_indices = @transform_4, window_bounds = array<i64: 1, 16, 256>}]} {
    %c0 = arith.constant 0 : index
    %c0_0 = arith.constant 0 : index
    %c0_1 = arith.constant 0 : index
    %0 = vector.load %arg1[%c0, %c0_0, %c0_1] : memref<1x8x256xf32, #tpu.memory_space<vmem>>, vector<1x8x256xf32>
    %c0_2 = arith.constant 0 : index
    %c0_3 = arith.constant 0 : index
    %1 = vector.load %arg2[%c0_2, %c0_3] : memref<9x256xf32, #tpu.memory_space<vmem>>, vector<9x256xf32>
    %c0_4 = arith.constant 0 : index
    %c0_5 = arith.constant 0 : index
    %2 = vector.load %arg3[%c0_4, %c0_5] : memref<20x10xf32, #tpu.memory_space<vmem>>, vector<20x10xf32>
    %c0_6 = arith.constant 0 : index
    %c0_7 = arith.constant 0 : index
    %3 = vector.load %arg4[%c0_6, %c0_7] : memref<4x22xf32, #tpu.memory_space<vmem>>, vector<4x22xf32>
    %4 = vector.shape_cast %0 : vector<1x8x256xf32> to vector<8x256xf32>
    %c17_i32 = arith.constant 17 : i32
    %5 = tpu.dynamic_rotate %4 by %c17_i32 dim 1 : vector<8x256xf32>, i32 -> vector<8x256xf32>
    %6 = vector.extract_strided_slice %1 {offsets = [0, 0], sizes = [1, 256], strides = [1, 1]} : vector<9x256xf32> to vector<1x256xf32>
    %7 = vector.broadcast %6 : vector<1x256xf32> to vector<8x256xf32>
    %8 = arith.mulf %5, %7 : vector<8x256xf32>
    %9 = vector.shape_cast %8 : vector<8x256xf32> to vector<1x8x256xf32>
    %c16_i32 = arith.constant 16 : i32
    %10 = tpu.dynamic_rotate %4 by %c16_i32 dim 1 : vector<8x256xf32>, i32 -> vector<8x256xf32>
    %11 = vector.extract_strided_slice %1 {offsets = [1, 0], sizes = [1, 256], strides = [1, 1]} : vector<9x256xf32> to vector<1x256xf32>
    %12 = vector.broadcast %11 : vector<1x256xf32> to vector<8x256xf32>
    %13 = arith.mulf %10, %12 : vector<8x256xf32>
    %14 = vector.shape_cast %13 : vector<8x256xf32> to vector<1x8x256xf32>
    %c15_i32 = arith.constant 15 : i32
    %15 = tpu.dynamic_rotate %4 by %c15_i32 dim 1 : vector<8x256xf32>, i32 -> vector<8x256xf32>
    %16 = vector.extract_strided_slice %1 {offsets = [2, 0], sizes = [1, 256], strides = [1, 1]} : vector<9x256xf32> to vector<1x256xf32>
    %17 = vector.broadcast %16 : vector<1x256xf32> to vector<8x256xf32>
    %18 = arith.mulf %15, %17 : vector<8x256xf32>
    %19 = vector.shape_cast %18 : vector<8x256xf32> to vector<1x8x256xf32>
    %c1_i32 = arith.constant 1 : i32
    %20 = tpu.dynamic_rotate %4 by %c1_i32 dim 1 : vector<8x256xf32>, i32 -> vector<8x256xf32>
    %21 = vector.extract_strided_slice %1 {offsets = [3, 0], sizes = [1, 256], strides = [1, 1]} : vector<9x256xf32> to vector<1x256xf32>
    %22 = vector.broadcast %21 : vector<1x256xf32> to vector<8x256xf32>
    %23 = arith.mulf %20, %22 : vector<8x256xf32>
    %24 = vector.shape_cast %23 : vector<8x256xf32> to vector<1x8x256xf32>
    %c255_i32 = arith.constant 255 : i32
    %25 = tpu.dynamic_rotate %4 by %c255_i32 dim 1 : vector<8x256xf32>, i32 -> vector<8x256xf32>
    %26 = vector.extract_strided_slice %1 {offsets = [5, 0], sizes = [1, 256], strides = [1, 1]} : vector<9x256xf32> to vector<1x256xf32>
    %27 = vector.broadcast %26 : vector<1x256xf32> to vector<8x256xf32>
    %28 = arith.mulf %25, %27 : vector<8x256xf32>
    %29 = vector.shape_cast %28 : vector<8x256xf32> to vector<1x8x256xf32>
    %c241_i32 = arith.constant 241 : i32
    %30 = tpu.dynamic_rotate %4 by %c241_i32 dim 1 : vector<8x256xf32>, i32 -> vector<8x256xf32>
    %31 = vector.extract_strided_slice %1 {offsets = [6, 0], sizes = [1, 256], strides = [1, 1]} : vector<9x256xf32> to vector<1x256xf32>
    %32 = vector.broadcast %31 : vector<1x256xf32> to vector<8x256xf32>
    %33 = arith.mulf %30, %32 : vector<8x256xf32>
    %34 = vector.shape_cast %33 : vector<8x256xf32> to vector<1x8x256xf32>
    %c240_i32 = arith.constant 240 : i32
    %35 = tpu.dynamic_rotate %4 by %c240_i32 dim 1 : vector<8x256xf32>, i32 -> vector<8x256xf32>
    %36 = vector.extract_strided_slice %1 {offsets = [7, 0], sizes = [1, 256], strides = [1, 1]} : vector<9x256xf32> to vector<1x256xf32>
    %37 = vector.broadcast %36 : vector<1x256xf32> to vector<8x256xf32>
    %38 = arith.mulf %35, %37 : vector<8x256xf32>
    %39 = vector.shape_cast %38 : vector<8x256xf32> to vector<1x8x256xf32>
    %c239_i32 = arith.constant 239 : i32
    %40 = tpu.dynamic_rotate %4 by %c239_i32 dim 1 : vector<8x256xf32>, i32 -> vector<8x256xf32>
    %41 = vector.extract_strided_slice %1 {offsets = [8, 0], sizes = [1, 256], strides = [1, 1]} : vector<9x256xf32> to vector<1x256xf32>
    %42 = vector.broadcast %41 : vector<1x256xf32> to vector<8x256xf32>
    %43 = arith.mulf %40, %42 : vector<8x256xf32>
    %44 = vector.shape_cast %43 : vector<8x256xf32> to vector<1x8x256xf32>
    %45 = vector.extract_strided_slice %2 {offsets = [0, 0], sizes = [8, 1], strides = [1, 1]} : vector<20x10xf32> to vector<8x1xf32>
    %46 = vector.shape_cast %45 : vector<8x1xf32> to vector<1x8x1xf32>
    %47 = vector.broadcast %46 : vector<1x8x1xf32> to vector<1x8x256xf32>
    %48 = arith.mulf %9, %47 : vector<1x8x256xf32>
    %49 = vector.extract_strided_slice %2 {offsets = [0, 1], sizes = [8, 1], strides = [1, 1]} : vector<20x10xf32> to vector<8x1xf32>
    %50 = vector.shape_cast %49 : vector<8x1xf32> to vector<1x8x1xf32>
    %51 = vector.broadcast %50 : vector<1x8x1xf32> to vector<1x8x256xf32>
    %52 = arith.mulf %14, %51 : vector<1x8x256xf32>
    %53 = arith.addf %48, %52 : vector<1x8x256xf32>
    %54 = vector.extract_strided_slice %2 {offsets = [0, 2], sizes = [8, 1], strides = [1, 1]} : vector<20x10xf32> to vector<8x1xf32>
    %55 = vector.shape_cast %54 : vector<8x1xf32> to vector<1x8x1xf32>
    %56 = vector.broadcast %55 : vector<1x8x1xf32> to vector<1x8x256xf32>
    %57 = arith.mulf %19, %56 : vector<1x8x256xf32>
    %58 = arith.addf %53, %57 : vector<1x8x256xf32>
    %59 = vector.extract_strided_slice %2 {offsets = [0, 3], sizes = [8, 1], strides = [1, 1]} : vector<20x10xf32> to vector<8x1xf32>
    %60 = vector.shape_cast %59 : vector<8x1xf32> to vector<1x8x1xf32>
    %61 = vector.broadcast %60 : vector<1x8x1xf32> to vector<1x8x256xf32>
    %62 = arith.mulf %24, %61 : vector<1x8x256xf32>
    %63 = arith.addf %58, %62 : vector<1x8x256xf32>
    %64 = vector.extract_strided_slice %2 {offsets = [0, 4], sizes = [8, 1], strides = [1, 1]} : vector<20x10xf32> to vector<8x1xf32>
    %65 = vector.shape_cast %64 : vector<8x1xf32> to vector<1x8x1xf32>
    %66 = vector.broadcast %65 : vector<1x8x1xf32> to vector<1x8x256xf32>
    %67 = arith.mulf %0, %66 : vector<1x8x256xf32>
    %68 = arith.addf %63, %67 : vector<1x8x256xf32>
    %69 = vector.extract_strided_slice %2 {offsets = [0, 5], sizes = [8, 1], strides = [1, 1]} : vector<20x10xf32> to vector<8x1xf32>
    %70 = vector.shape_cast %69 : vector<8x1xf32> to vector<1x8x1xf32>
    %71 = vector.broadcast %70 : vector<1x8x1xf32> to vector<1x8x256xf32>
    %72 = arith.mulf %29, %71 : vector<1x8x256xf32>
    %73 = arith.addf %68, %72 : vector<1x8x256xf32>
    %74 = vector.extract_strided_slice %2 {offsets = [0, 6], sizes = [8, 1], strides = [1, 1]} : vector<20x10xf32> to vector<8x1xf32>
    %75 = vector.shape_cast %74 : vector<8x1xf32> to vector<1x8x1xf32>
    %76 = vector.broadcast %75 : vector<1x8x1xf32> to vector<1x8x256xf32>
    %77 = arith.mulf %34, %76 : vector<1x8x256xf32>
    %78 = arith.addf %73, %77 : vector<1x8x256xf32>
    %79 = vector.extract_strided_slice %2 {offsets = [0, 7], sizes = [8, 1], strides = [1, 1]} : vector<20x10xf32> to vector<8x1xf32>
    %80 = vector.shape_cast %79 : vector<8x1xf32> to vector<1x8x1xf32>
    %81 = vector.broadcast %80 : vector<1x8x1xf32> to vector<1x8x256xf32>
    %82 = arith.mulf %39, %81 : vector<1x8x256xf32>
    %83 = arith.addf %78, %82 : vector<1x8x256xf32>
    %84 = vector.extract_strided_slice %2 {offsets = [0, 8], sizes = [8, 1], strides = [1, 1]} : vector<20x10xf32> to vector<8x1xf32>
    %85 = vector.shape_cast %84 : vector<8x1xf32> to vector<1x8x1xf32>
    %86 = vector.broadcast %85 : vector<1x8x1xf32> to vector<1x8x256xf32>
    %87 = arith.mulf %44, %86 : vector<1x8x256xf32>
    %88 = arith.addf %83, %87 : vector<1x8x256xf32>
    %89 = vector.extract_strided_slice %2 {offsets = [0, 9], sizes = [8, 1], strides = [1, 1]} : vector<20x10xf32> to vector<8x1xf32>
    %90 = vector.shape_cast %89 : vector<8x1xf32> to vector<1x8x1xf32>
    %91 = vector.broadcast %90 : vector<1x8x1xf32> to vector<1x8x256xf32>
    %92 = arith.addf %88, %91 : vector<1x8x256xf32>
    %cst = arith.constant 0.000000e+00 : f32
    %93 = vector.broadcast %cst : f32 to vector<1x8x256xf32>
    %94 = arith.maximumf %92, %93 : vector<1x8x256xf32>
    %95 = vector.extract_strided_slice %3 {offsets = [0, 0], sizes = [4, 8], strides = [1, 1]} : vector<4x22xf32> to vector<4x8xf32>
    %96 = vector.extract_strided_slice %3 {offsets = [0, 8], sizes = [4, 1], strides = [1, 1]} : vector<4x22xf32> to vector<4x1xf32>
    %97 = vector.shape_cast %96 : vector<4x1xf32> to vector<1x4x1xf32>
    %98 = vector.shape_cast %94 : vector<1x8x256xf32> to vector<8x256xf32>
    %cst_8 = arith.constant dense<0.000000e+00> : vector<4x256xf32>
    %99 = tpu.matmul %95, %98, %cst_8 {dimension_numbers = #tpu.dot_dimension_numbers<[1], [0], [0], [1], [0, 0, 1, 1], [], []>} : vector<4x8xf32>, vector<8x256xf32>, vector<4x256xf32> -> vector<4x256xf32>
    %100 = vector.shape_cast %99 : vector<4x256xf32> to vector<1x4x256xf32>
    %101 = vector.broadcast %97 : vector<1x4x1xf32> to vector<1x4x256xf32>
    %102 = arith.addf %100, %101 : vector<1x4x256xf32>
    %cst_9 = arith.constant 0.000000e+00 : f32
    %103 = vector.broadcast %cst_9 : f32 to vector<1x4x256xf32>
    %104 = arith.maximumf %102, %103 : vector<1x4x256xf32>
    %105 = vector.shape_cast %104 : vector<1x4x256xf32> to vector<4x256xf32>
    %c17_i32_10 = arith.constant 17 : i32
    %106 = tpu.dynamic_rotate %105 by %c17_i32_10 dim 1 : vector<4x256xf32>, i32 -> vector<4x256xf32>
    %107 = vector.extract_strided_slice %1 {offsets = [0, 0], sizes = [1, 256], strides = [1, 1]} : vector<9x256xf32> to vector<1x256xf32>
    %108 = vector.broadcast %107 : vector<1x256xf32> to vector<4x256xf32>
    %109 = arith.mulf %106, %108 : vector<4x256xf32>
    %110 = vector.shape_cast %109 : vector<4x256xf32> to vector<1x4x256xf32>
    %c16_i32_11 = arith.constant 16 : i32
    %111 = tpu.dynamic_rotate %105 by %c16_i32_11 dim 1 : vector<4x256xf32>, i32 -> vector<4x256xf32>
    %112 = vector.extract_strided_slice %1 {offsets = [1, 0], sizes = [1, 256], strides = [1, 1]} : vector<9x256xf32> to vector<1x256xf32>
    %113 = vector.broadcast %112 : vector<1x256xf32> to vector<4x256xf32>
    %114 = arith.mulf %111, %113 : vector<4x256xf32>
    %115 = vector.shape_cast %114 : vector<4x256xf32> to vector<1x4x256xf32>
    %c15_i32_12 = arith.constant 15 : i32
    %116 = tpu.dynamic_rotate %105 by %c15_i32_12 dim 1 : vector<4x256xf32>, i32 -> vector<4x256xf32>
    %117 = vector.extract_strided_slice %1 {offsets = [2, 0], sizes = [1, 256], strides = [1, 1]} : vector<9x256xf32> to vector<1x256xf32>
    %118 = vector.broadcast %117 : vector<1x256xf32> to vector<4x256xf32>
    %119 = arith.mulf %116, %118 : vector<4x256xf32>
    %120 = vector.shape_cast %119 : vector<4x256xf32> to vector<1x4x256xf32>
    %c1_i32_13 = arith.constant 1 : i32
    %121 = tpu.dynamic_rotate %105 by %c1_i32_13 dim 1 : vector<4x256xf32>, i32 -> vector<4x256xf32>
    %122 = vector.extract_strided_slice %1 {offsets = [3, 0], sizes = [1, 256], strides = [1, 1]} : vector<9x256xf32> to vector<1x256xf32>
    %123 = vector.broadcast %122 : vector<1x256xf32> to vector<4x256xf32>
    %124 = arith.mulf %121, %123 : vector<4x256xf32>
    %125 = vector.shape_cast %124 : vector<4x256xf32> to vector<1x4x256xf32>
    %c255_i32_14 = arith.constant 255 : i32
    %126 = tpu.dynamic_rotate %105 by %c255_i32_14 dim 1 : vector<4x256xf32>, i32 -> vector<4x256xf32>
    %127 = vector.extract_strided_slice %1 {offsets = [5, 0], sizes = [1, 256], strides = [1, 1]} : vector<9x256xf32> to vector<1x256xf32>
    %128 = vector.broadcast %127 : vector<1x256xf32> to vector<4x256xf32>
    %129 = arith.mulf %126, %128 : vector<4x256xf32>
    %130 = vector.shape_cast %129 : vector<4x256xf32> to vector<1x4x256xf32>
    %c241_i32_15 = arith.constant 241 : i32
    %131 = tpu.dynamic_rotate %105 by %c241_i32_15 dim 1 : vector<4x256xf32>, i32 -> vector<4x256xf32>
    %132 = vector.extract_strided_slice %1 {offsets = [6, 0], sizes = [1, 256], strides = [1, 1]} : vector<9x256xf32> to vector<1x256xf32>
    %133 = vector.broadcast %132 : vector<1x256xf32> to vector<4x256xf32>
    %134 = arith.mulf %131, %133 : vector<4x256xf32>
    %135 = vector.shape_cast %134 : vector<4x256xf32> to vector<1x4x256xf32>
    %c240_i32_16 = arith.constant 240 : i32
    %136 = tpu.dynamic_rotate %105 by %c240_i32_16 dim 1 : vector<4x256xf32>, i32 -> vector<4x256xf32>
    %137 = vector.extract_strided_slice %1 {offsets = [7, 0], sizes = [1, 256], strides = [1, 1]} : vector<9x256xf32> to vector<1x256xf32>
    %138 = vector.broadcast %137 : vector<1x256xf32> to vector<4x256xf32>
    %139 = arith.mulf %136, %138 : vector<4x256xf32>
    %140 = vector.shape_cast %139 : vector<4x256xf32> to vector<1x4x256xf32>
    %c239_i32_17 = arith.constant 239 : i32
    %141 = tpu.dynamic_rotate %105 by %c239_i32_17 dim 1 : vector<4x256xf32>, i32 -> vector<4x256xf32>
    %142 = vector.extract_strided_slice %1 {offsets = [8, 0], sizes = [1, 256], strides = [1, 1]} : vector<9x256xf32> to vector<1x256xf32>
    %143 = vector.broadcast %142 : vector<1x256xf32> to vector<4x256xf32>
    %144 = arith.mulf %141, %143 : vector<4x256xf32>
    %145 = vector.shape_cast %144 : vector<4x256xf32> to vector<1x4x256xf32>
    %146 = vector.extract_strided_slice %2 {offsets = [8, 0], sizes = [8, 1], strides = [1, 1]} : vector<20x10xf32> to vector<8x1xf32>
    %147 = vector.shape_cast %146 : vector<8x1xf32> to vector<1x8x1xf32>
    %148 = vector.broadcast %147 : vector<1x8x1xf32> to vector<1x8x256xf32>
    %149 = arith.mulf %9, %148 : vector<1x8x256xf32>
    %150 = vector.extract_strided_slice %2 {offsets = [8, 1], sizes = [8, 1], strides = [1, 1]} : vector<20x10xf32> to vector<8x1xf32>
    %151 = vector.shape_cast %150 : vector<8x1xf32> to vector<1x8x1xf32>
    %152 = vector.broadcast %151 : vector<1x8x1xf32> to vector<1x8x256xf32>
    %153 = arith.mulf %14, %152 : vector<1x8x256xf32>
    %154 = arith.addf %149, %153 : vector<1x8x256xf32>
    %155 = vector.extract_strided_slice %2 {offsets = [8, 2], sizes = [8, 1], strides = [1, 1]} : vector<20x10xf32> to vector<8x1xf32>
    %156 = vector.shape_cast %155 : vector<8x1xf32> to vector<1x8x1xf32>
    %157 = vector.broadcast %156 : vector<1x8x1xf32> to vector<1x8x256xf32>
    %158 = arith.mulf %19, %157 : vector<1x8x256xf32>
    %159 = arith.addf %154, %158 : vector<1x8x256xf32>
    %160 = vector.extract_strided_slice %2 {offsets = [8, 3], sizes = [8, 1], strides = [1, 1]} : vector<20x10xf32> to vector<8x1xf32>
    %161 = vector.shape_cast %160 : vector<8x1xf32> to vector<1x8x1xf32>
    %162 = vector.broadcast %161 : vector<1x8x1xf32> to vector<1x8x256xf32>
    %163 = arith.mulf %24, %162 : vector<1x8x256xf32>
    %164 = arith.addf %159, %163 : vector<1x8x256xf32>
    %165 = vector.extract_strided_slice %2 {offsets = [8, 4], sizes = [8, 1], strides = [1, 1]} : vector<20x10xf32> to vector<8x1xf32>
    %166 = vector.shape_cast %165 : vector<8x1xf32> to vector<1x8x1xf32>
    %167 = vector.broadcast %166 : vector<1x8x1xf32> to vector<1x8x256xf32>
    %168 = arith.mulf %0, %167 : vector<1x8x256xf32>
    %169 = arith.addf %164, %168 : vector<1x8x256xf32>
    %170 = vector.extract_strided_slice %2 {offsets = [8, 5], sizes = [8, 1], strides = [1, 1]} : vector<20x10xf32> to vector<8x1xf32>
    %171 = vector.shape_cast %170 : vector<8x1xf32> to vector<1x8x1xf32>
    %172 = vector.broadcast %171 : vector<1x8x1xf32> to vector<1x8x256xf32>
    %173 = arith.mulf %29, %172 : vector<1x8x256xf32>
    %174 = arith.addf %169, %173 : vector<1x8x256xf32>
    %175 = vector.extract_strided_slice %2 {offsets = [8, 6], sizes = [8, 1], strides = [1, 1]} : vector<20x10xf32> to vector<8x1xf32>
    %176 = vector.shape_cast %175 : vector<8x1xf32> to vector<1x8x1xf32>
    %177 = vector.broadcast %176 : vector<1x8x1xf32> to vector<1x8x256xf32>
    %178 = arith.mulf %34, %177 : vector<1x8x256xf32>
    %179 = arith.addf %174, %178 : vector<1x8x256xf32>
    %180 = vector.extract_strided_slice %2 {offsets = [8, 7], sizes = [8, 1], strides = [1, 1]} : vector<20x10xf32> to vector<8x1xf32>
    %181 = vector.shape_cast %180 : vector<8x1xf32> to vector<1x8x1xf32>
    %182 = vector.broadcast %181 : vector<1x8x1xf32> to vector<1x8x256xf32>
    %183 = arith.mulf %39, %182 : vector<1x8x256xf32>
    %184 = arith.addf %179, %183 : vector<1x8x256xf32>
    %185 = vector.extract_strided_slice %2 {offsets = [8, 8], sizes = [8, 1], strides = [1, 1]} : vector<20x10xf32> to vector<8x1xf32>
    %186 = vector.shape_cast %185 : vector<8x1xf32> to vector<1x8x1xf32>
    %187 = vector.broadcast %186 : vector<1x8x1xf32> to vector<1x8x256xf32>
    %188 = arith.mulf %44, %187 : vector<1x8x256xf32>
    %189 = arith.addf %184, %188 : vector<1x8x256xf32>
    %190 = vector.extract_strided_slice %2 {offsets = [8, 9], sizes = [8, 1], strides = [1, 1]} : vector<20x10xf32> to vector<8x1xf32>
    %191 = vector.shape_cast %190 : vector<8x1xf32> to vector<1x8x1xf32>
    %192 = vector.broadcast %191 : vector<1x8x1xf32> to vector<1x8x256xf32>
    %193 = arith.addf %189, %192 : vector<1x8x256xf32>
    %cst_18 = arith.constant 0.000000e+00 : f32
    %194 = vector.broadcast %cst_18 : f32 to vector<1x8x256xf32>
    %195 = arith.maximumf %193, %194 : vector<1x8x256xf32>
    %196 = vector.extract_strided_slice %2 {offsets = [16, 0], sizes = [4, 1], strides = [1, 1]} : vector<20x10xf32> to vector<4x1xf32>
    %197 = vector.shape_cast %196 : vector<4x1xf32> to vector<1x4x1xf32>
    %198 = vector.broadcast %197 : vector<1x4x1xf32> to vector<1x4x256xf32>
    %199 = arith.mulf %110, %198 : vector<1x4x256xf32>
    %200 = vector.extract_strided_slice %2 {offsets = [16, 1], sizes = [4, 1], strides = [1, 1]} : vector<20x10xf32> to vector<4x1xf32>
    %201 = vector.shape_cast %200 : vector<4x1xf32> to vector<1x4x1xf32>
    %202 = vector.broadcast %201 : vector<1x4x1xf32> to vector<1x4x256xf32>
    %203 = arith.mulf %115, %202 : vector<1x4x256xf32>
    %204 = arith.addf %199, %203 : vector<1x4x256xf32>
    %205 = vector.extract_strided_slice %2 {offsets = [16, 2], sizes = [4, 1], strides = [1, 1]} : vector<20x10xf32> to vector<4x1xf32>
    %206 = vector.shape_cast %205 : vector<4x1xf32> to vector<1x4x1xf32>
    %207 = vector.broadcast %206 : vector<1x4x1xf32> to vector<1x4x256xf32>
    %208 = arith.mulf %120, %207 : vector<1x4x256xf32>
    %209 = arith.addf %204, %208 : vector<1x4x256xf32>
    %210 = vector.extract_strided_slice %2 {offsets = [16, 3], sizes = [4, 1], strides = [1, 1]} : vector<20x10xf32> to vector<4x1xf32>
    %211 = vector.shape_cast %210 : vector<4x1xf32> to vector<1x4x1xf32>
    %212 = vector.broadcast %211 : vector<1x4x1xf32> to vector<1x4x256xf32>
    %213 = arith.mulf %125, %212 : vector<1x4x256xf32>
    %214 = arith.addf %209, %213 : vector<1x4x256xf32>
    %215 = vector.extract_strided_slice %2 {offsets = [16, 4], sizes = [4, 1], strides = [1, 1]} : vector<20x10xf32> to vector<4x1xf32>
    %216 = vector.shape_cast %215 : vector<4x1xf32> to vector<1x4x1xf32>
    %217 = vector.broadcast %216 : vector<1x4x1xf32> to vector<1x4x256xf32>
    %218 = arith.mulf %104, %217 : vector<1x4x256xf32>
    %219 = arith.addf %214, %218 : vector<1x4x256xf32>
    %220 = vector.extract_strided_slice %2 {offsets = [16, 5], sizes = [4, 1], strides = [1, 1]} : vector<20x10xf32> to vector<4x1xf32>
    %221 = vector.shape_cast %220 : vector<4x1xf32> to vector<1x4x1xf32>
    %222 = vector.broadcast %221 : vector<1x4x1xf32> to vector<1x4x256xf32>
    %223 = arith.mulf %130, %222 : vector<1x4x256xf32>
    %224 = arith.addf %219, %223 : vector<1x4x256xf32>
    %225 = vector.extract_strided_slice %2 {offsets = [16, 6], sizes = [4, 1], strides = [1, 1]} : vector<20x10xf32> to vector<4x1xf32>
    %226 = vector.shape_cast %225 : vector<4x1xf32> to vector<1x4x1xf32>
    %227 = vector.broadcast %226 : vector<1x4x1xf32> to vector<1x4x256xf32>
    %228 = arith.mulf %135, %227 : vector<1x4x256xf32>
    %229 = arith.addf %224, %228 : vector<1x4x256xf32>
    %230 = vector.extract_strided_slice %2 {offsets = [16, 7], sizes = [4, 1], strides = [1, 1]} : vector<20x10xf32> to vector<4x1xf32>
    %231 = vector.shape_cast %230 : vector<4x1xf32> to vector<1x4x1xf32>
    %232 = vector.broadcast %231 : vector<1x4x1xf32> to vector<1x4x256xf32>
    %233 = arith.mulf %140, %232 : vector<1x4x256xf32>
    %234 = arith.addf %229, %233 : vector<1x4x256xf32>
    %235 = vector.extract_strided_slice %2 {offsets = [16, 8], sizes = [4, 1], strides = [1, 1]} : vector<20x10xf32> to vector<4x1xf32>
    %236 = vector.shape_cast %235 : vector<4x1xf32> to vector<1x4x1xf32>
    %237 = vector.broadcast %236 : vector<1x4x1xf32> to vector<1x4x256xf32>
    %238 = arith.mulf %145, %237 : vector<1x4x256xf32>
    %239 = arith.addf %234, %238 : vector<1x4x256xf32>
    %240 = vector.extract_strided_slice %2 {offsets = [16, 9], sizes = [4, 1], strides = [1, 1]} : vector<20x10xf32> to vector<4x1xf32>
    %241 = vector.shape_cast %240 : vector<4x1xf32> to vector<1x4x1xf32>
    %242 = vector.broadcast %241 : vector<1x4x1xf32> to vector<1x4x256xf32>
    %243 = arith.addf %239, %242 : vector<1x4x256xf32>
    %cst_19 = arith.constant 0.000000e+00 : f32
    %244 = vector.broadcast %cst_19 : f32 to vector<1x4x256xf32>
    %245 = arith.maximumf %243, %244 : vector<1x4x256xf32>
    %246 = vector.extract_strided_slice %3 {offsets = [0, 9], sizes = [4, 8], strides = [1, 1]} : vector<4x22xf32> to vector<4x8xf32>
    %247 = vector.extract_strided_slice %3 {offsets = [0, 17], sizes = [4, 4], strides = [1, 1]} : vector<4x22xf32> to vector<4x4xf32>
    %248 = vector.extract_strided_slice %3 {offsets = [0, 21], sizes = [4, 1], strides = [1, 1]} : vector<4x22xf32> to vector<4x1xf32>
    %249 = vector.shape_cast %248 : vector<4x1xf32> to vector<1x4x1xf32>
    %250 = vector.shape_cast %195 : vector<1x8x256xf32> to vector<8x256xf32>
    %cst_20 = arith.constant dense<0.000000e+00> : vector<4x256xf32>
    %251 = tpu.matmul %246, %250, %cst_20 {dimension_numbers = #tpu.dot_dimension_numbers<[1], [0], [0], [1], [0, 0, 1, 1], [], []>} : vector<4x8xf32>, vector<8x256xf32>, vector<4x256xf32> -> vector<4x256xf32>
    %252 = vector.shape_cast %251 : vector<4x256xf32> to vector<1x4x256xf32>
    %253 = vector.shape_cast %245 : vector<1x4x256xf32> to vector<4x256xf32>
    %cst_21 = arith.constant dense<0.000000e+00> : vector<4x256xf32>
    %254 = tpu.matmul %247, %253, %cst_21 {dimension_numbers = #tpu.dot_dimension_numbers<[1], [0], [0], [1], [0, 0, 1, 1], [], []>} : vector<4x4xf32>, vector<4x256xf32>, vector<4x256xf32> -> vector<4x256xf32>
    %255 = vector.shape_cast %254 : vector<4x256xf32> to vector<1x4x256xf32>
    %256 = arith.addf %252, %255 : vector<1x4x256xf32>
    %257 = vector.broadcast %249 : vector<1x4x1xf32> to vector<1x4x256xf32>
    %258 = arith.addf %256, %257 : vector<1x4x256xf32>
    %cst_22 = arith.constant 0.000000e+00 : f32
    %259 = vector.broadcast %cst_22 : f32 to vector<1x4x256xf32>
    %260 = arith.maximumf %258, %259 : vector<1x4x256xf32>
    %261 = tpu.concatenate %0, %104, %260 in 1 : vector<1x8x256xf32>, vector<1x4x256xf32>, vector<1x4x256xf32> -> vector<1x16x256xf32>
    %c0_23 = arith.constant 0 : index
    %c0_24 = arith.constant 0 : index
    %c0_25 = arith.constant 0 : index
    %262 = vector.load %arg5[%c0_23, %c0_24, %c0_25] : memref<1x16x256xf32, #tpu.memory_space<vmem>>, vector<1x16x256xf32>
    tpu.vector_store %arg5[%c0_23, %c0_24, %c0_25], %261 {strides = array<i32>} : memref<1x16x256xf32, #tpu.memory_space<vmem>>, vector<1x16x256xf32>,
    return
  }
  func.func @transform_0(%arg0: i32) -> (i32, i32, i32) {
    %c0_i32 = arith.constant 0 : i32
    %c0_i32_0 = arith.constant 0 : i32
    %c0_i32_1 = arith.constant 0 : i32
    return %arg0, %c0_i32, %c0_i32_0 : i32, i32, i32
  }
  func.func @transform_1(%arg0: i32) -> (i32, i32) {
    %c0_i32 = arith.constant 0 : i32
    %c0_i32_0 = arith.constant 0 : i32
    %c0_i32_1 = arith.constant 0 : i32
    return %c0_i32, %c0_i32_0 : i32, i32
  }
  func.func @transform_2(%arg0: i32) -> (i32, i32) {
    %c0_i32 = arith.constant 0 : i32
    %c0_i32_0 = arith.constant 0 : i32
    %c0_i32_1 = arith.constant 0 : i32
    return %c0_i32, %c0_i32_0 : i32, i32
  }
  func.func @transform_3(%arg0: i32) -> (i32, i32) {
    %c0_i32 = arith.constant 0 : i32
    %c0_i32_0 = arith.constant 0 : i32
    %c0_i32_1 = arith.constant 0 : i32
    return %c0_i32, %c0_i32_0 : i32, i32
  }
  func.func @transform_4(%arg0: i32) -> (i32, i32, i32) {
    %c0_i32 = arith.constant 0 : i32
    %c0_i32_0 = arith.constant 0 : i32
    %c0_i32_1 = arith.constant 0 : i32
    return %arg0, %c0_i32, %c0_i32_0 : i32, i32, i32
  }
}

</mosaic_0001>

<bundles_post_ra>
// kernel: tpu_custom_call.1
= control target key start
LH: loop header
LB: loop body
LE: loop exit
PB: predicated region body
PF: predicated region fallthrough
CT: control target
= control target key end

     0   :  { %9 = vsyncpa [#allocation3], 0  ;;  %s1851_s0 = inlined_call_operand.vmem [shape: f32[2,8,256], index: 0, kind: input, shape index: {}]   ;;  %s1852_s1 = inlined_call_operand.hbm [shape: f32[9,256], index: 1, kind: input, shape index: {}]   ;;  %s1853_s2 = inlined_call_operand.vmem [shape: f32[20,10], index: 2, kind: input, shape index: {}]   ;;  %s1854_s3 = inlined_call_operand.vmem [shape: f32[4,22], index: 3, kind: input, shape index: {}]   ;;  %s1855_s4 = inlined_call_operand.hbm [shape: f32[2,16,256], index: 4, kind: output, shape index: {}]  }
   0x1   :  { %10 = vsyncpa [#allocation4], 0 }
   0x2   :  { %12 = vsyncpa [#allocation4 + $0x1], 0  ;;  %s1286_s15 = smov 0   ;;  %s1288_s16 = smov 0  }
   0x3   :  { %s1290_s17 = smov 0   ;;  %s1292_s18 = smov 0  }
   0x4 LB: > { %s1307_s19 = sadd.s32 4294967295, %s1233_s18   ;;  %s1011_s20 = sadd.s32 4294967294, %s1233_s18   ;;  %s1233_s18 = sphi %s1292_s18, %s1871_s18   ;;  %s1229_s17 = sphi %s1290_s17, %s1870_s17   ;;  %s1225_s16 = sphi %s1288_s16, %s1869_s16   ;;  %s1221_s15 = sphi %s1286_s15, %s1868_s15  }
   0x5   : > { %s1311_s21 = sadd.s32 1, %s1233_s18   ;;  %s114_s22 = sadd.s32 1, %s1229_s17 }
   0x6   : > { %s111_s23 = ssub.s32 %s1233_s18, %s1311_s21  ;;  %p124_p0 = scmp.ne.s32.totalorder %s1229_s17, %s1225_s16 }
   0x7   : > { %p112_p1 = scmp.eq.s32.totalorder %s111_s23, 0  ;;  %p125_p2 = scmp.eq.s32.totalorder %s1307_s19, 1 }
   0x8   : > { %p130_p3 = scmp.ne.s32.totalorder %s1225_s16, %s1221_s15  ;;  %p131_p4 = scmp.eq.s32.totalorder %s1011_s20, 1 }
   0x9   : > { %s1322_s24 = scalar_select %p112_p1, %s1229_s17, %s114_s22  }
   0xa   : > { %p1324_p5 = por %p125_p2, %p124_p0  ;;  %p1328_p6 = por %p131_p4, %p130_p3 }
   0xb   : > { %p1012_p7 = scmp.ge.s32.totalorder %s1233_s18, 1  ;;  %p138_p8 = scmp.lt.s32.totalorder %s1233_s18, 3 }
   0xc   : > { %s1859_s25 = scalar_select %p1324_p5, 1, 0 }
   0xd   : > { %s1860_s26 = scalar_select %p1328_p6, 1, 0 }
   0xe   : > { %p1856_p9 = scmp.eq.s32.totalorder %s1307_s19, 0  ;;  %p1335_p10 = pnand %p1012_p7, %p138_p8 }
   0xf   : > { %s1235_s28 = smov [#allocation2]   ;;  %s1139_s7 = scalar_lea.hbm %s1852_s1, 512 }
  0x10   : > { %s1861_s27 = scalar_select %p1335_p10, 1, 0 }
  0x11   : > { %s150_s29 = sshll.u32 %s1235_s28, 4  ;;  %p1042_p11 = pneg %p1335_p10  ;;  %s151_s29 = int_to_ptr.vmem [resolvable:$true] %s150_s29 }
  0x12   : > { %p1140_p13 = scmp.ne.s32.totalorder %s1852_s1, %s1139_s7  ;;  %p1146_p3 = scmp.lt.u32.totalorder %s1139_s7, %s1852_s1 }
  0x13   : > { %p1343_p12 = pnand %p1856_p9, %p1042_p11 }
  0x15   : > { %p1141_p0 = pneg %p1343_p12 }
  0x17   : > { %p1142_p1 = pnand %p1141_p0, %p1140_p13 }
  0x19   : > { %p1143_p2 = pneg %p1142_p1 }
  0x1b   : > { %p1148_p4 = pnand %p1146_p3, %p1143_p2 }
  0x1d   : > { %1151 = shalt.err (!%p1148_p4)
}
  0x1e   : > { %s1152_s12 = scalar_lea.vmem %s151_s29, 512  ;;  %p1160_p9 = scmp.lt.s32.totalorder %s151_s29, %s151_s29 }
  0x1f   : > { %p1153_p7 = scmp.ne.s32.totalorder %s151_s29, %s1152_s12  ;;  %p1161_p6 = scmp.lt.s32.totalorder %s1152_s12, %s1152_s12 }
  0x21   : > { %p1155_p8 = pnand %p1153_p7, %p1141_p0  ;;  %p1162_p5 = por %p1161_p6, %p1160_p9 }
  0x23   : > { %p1156_p11 = pneg %p1155_p8 }
  0x25   : > { %p1163_p10 = pnand %p1162_p5, %p1156_p11 }
  0x27   : > { %1166 = shalt.err (!%p1163_p10)
}
  0x28   : > { %s1236_s13 = smov 256   ;;  %s1237_s14 = smov 16  }
  0x29   : > { %1045 = dma.hbm_to_vmem [thread:$0]  (!%p1343_p12), %s1852_s1, 512, %s151_s29, [#allocation3], %s1236_s13, %s1236_s13, %s1237_s14  }
  0x2a   : > { %p1863_p13 = scmp.ne.s32.totalorder %s1861_s27, 0 }
  0x2b   : > { %p1864_p1 = scmp.eq.s32.totalorder (!%p1863_p13), %s1307_s19, 0 }
  0x2c   : > { %180 = sbr.rel (%p1863_p13) target bundleno = 871 (0x367), region = 36 }
  0x33   : > { %1212 = dma.done.wait (%p1864_p1), [#allocation3], 512   ;;  %p1865_p0 = pmov %p1864_p1 }
  0x34   : > { %p206_p5 = scmp.lt.s32.totalorder %s1307_s19, 1  ;;  %v1238_v0 = vmov 2   ;;  %v1239_v1 = vmov 0   ;;  %v217_v2 = vld [vmem:[%s1853_s2] sm:$0xff]  ;;  %v1240_v4 = vmov 1   ;;  %s1241_s7 = smov 17   ;;  %v225_v27 = vlaneseq }
  0x35   : > { %1214 = vsyncadd (%p1865_p0), [#allocation3], 4294966784  ;;  %1112 = vset.pattern.permute.xlu1 %v1238_v0  ;;  %1110 = vset.pattern.permute.xlu0 %v1239_v1  ;;  %v1242_v6 = vmov 6   ;;  %s1243_s8 = smov 16   ;;  %v1244_v7 = vmov 3   ;;  %s1245_s9 = smov 15  }
  0x36   : > { %s207_s23 = scalar_select %p206_p5, %s1307_s19, 1  ;;  %375 = vperm.xlu1 %1112, %v217_v2   ;;  %361 = vperm.xlu0 %1110, %v217_v2   ;;  %v1246_v8 = vmov 4   ;;  %v1247_v9 = vmov 5   ;;  %v1250_v10 = vmov 8   ;;  %v1252_v11 = vmov 7   ;;  %v218_v13 = vld [vmem:[%s1853_s2 + $0x8] sm:$0xff] }
  0x37   : > { %s1248_s10 = smov 1   ;;  %s1249_s11 = smov 127   ;;  %v1254_v12 = vmov 9   ;;  %v1420_v14 = vld [vmem:[%s1853_s2 + $0x10] sm:$0xf]  ;;  %v1256_v16 = vmov 0.0  }
  0x38   : > { %s1032_s28 = sshll.u32 %s207_s23, 4  ;;  %s1251_s12 = smov 113   ;;  %v1430_v15 = vld [vmem:[%s1854_s3] sm:$0xf]  ;;  %506 = vmatprep.mubr.f32.mxu0 %v1256_v16  ;;  %811 = vmatprep.mubr.f32.mxu1 %v1256_v16  ;;  %v1455_v29 = vshrl.u32 %v225_v27, 7  ;;  %v1459_v31 = vand.u32 127, %v225_v27 }
  0x39   : > { %s210_s30 = scalar_lea.vmem %s1851_s0, %s1032_s28  ;;  %s1253_s13 = smov 111   ;;  %v1465_v36 = vld [vmem:[#allocation2] sm:$0xff]  ;;  %v1467_v37 = vld [vmem:[#allocation2 + $0x8] sm:$0xff]  ;;  %vm438_vm8 = vcmask 64512   ;;  %vm823_vm9 = vcmask 1043456   ;;  %vm820_vm10 = vcmask 31744  }
  0x3a   : > { %v1379_v3 = vld [vmem:[%s210_s30] sm:$0xff]  ;;  %1111 = vset.pattern.permute.xlu0 %v1240_v4  ;;  %v1383_v5 = vld [vmem:[%s210_s30 + $0x8] sm:$0xff]  ;;  %1116 = vset.pattern.permute.xlu1 %v1242_v6  ;;  %s1255_s22 = smov 112   ;;  %v249_v32 = vsub.s32 1, %v1455_v29  ;;  %v232_v34 = vsub.s32 0, %v1455_v29  ;;  %vm244_vm0 = vcmp.lt.s32.totalorder %v1459_v31, 16 }
  0x3b   : > { %221 = vrot.lane.b32.xlu1 %v1379_v3, %s1241_s7  ;;  %367 = vperm.xlu0 %1111, %v217_v2   ;;  %v266_v35 = vsub.s32 2, %v1455_v29  ;;  %vm227_vm1 = vcmp.lt.s32.totalorder %v1459_v31, 17  ;;  %vm261_vm2 = vcmp.lt.s32.totalorder %v1459_v31, 15  ;;  %v283_v44 = vsub.s32 3, %v1455_v29  ;;  %s203_s30 = sand.u32 1, %s1225_s16   ;;  %s1258_s6 = smov 119  }
  0x3c   : > { %v1471_v38 = vrot.slane %v1465_v36, %v249_v32  ;;  %v1474_v39 = vrot.slane %v1467_v37, %v249_v32  ;;  %v1487_v45 = vrot.slane %v1465_v36, %v232_v34  ;;  %v1490_v46 = vrot.slane %v1467_v37, %v232_v34  ;;  %s1017_s5 = sshll.u32 %s203_s30, 5  ;;  %p1866_p9 = scmp.ne.s32.totalorder %s1859_s25, 0 }
  0x3d   : > { %v1493_v47 = vrot.slane %v1465_v36, %v266_v35  ;;  %v1500_v50 = vrot.slane %v1467_v37, %v266_v35  ;;  %vm278_vm3 = vcmp.lt.s32.totalorder %v1459_v31, 1  ;;  %v1514_v56 = vrot.slane %v1465_v36, %v283_v44  ;;  %s1259_s20 = smov [#allocation5]  }
  0x3e   : > { %v1517_v57 = vrot.slane %v1467_v37, %v283_v44  ;;  %vm295_vm4 = vcmp.lt.s32.totalorder %v1459_v31, 127  ;;  %vm312_vm5 = vcmp.lt.s32.totalorder %v1459_v31, 113  ;;  %v334_v34 = vsub.s32 7, %v1455_v29 }
  0x3f   : > { %223 = vrot.lane.b32.xlu1 %v1383_v5, %s1241_s7  ;;  %240 = vrot.lane.b32.xlu0 %v1379_v3, %s1243_s8  ;;  %vm329_vm6 = vcmp.lt.s32.totalorder %v1459_v31, 112  ;;  %vm346_vm7 = vcmp.lt.s32.totalorder %v1459_v31, 111 }
  0x40   : > { %1113 = vset.pattern.permute.xlu0 %v1244_v7 }
  0x43   : > { %242 = vrot.lane.b32.xlu1 %v1383_v5, %s1243_s8  ;;  %383 = vperm.xlu0 %1113, %v217_v2  }
  0x47   : > { %257 = vrot.lane.b32.xlu1 %v1379_v3, %s1245_s9  ;;  %1114 = vset.pattern.permute.xlu0 %v1246_v8 }
  0x48   : > { %391 = vperm.xlu0 %1114, %v217_v2  }
  0x4b   : > { %259 = vrot.lane.b32.xlu1 %v1383_v5, %s1245_s9 }
  0x4c   : > { %1115 = vset.pattern.permute.xlu0 %v1247_v9 }
  0x4d   : > { %399 = vperm.xlu0 %1115, %v217_v2  }
  0x4f   : > { %274 = vrot.lane.b32.xlu1 %v1379_v3, %s1248_s10 }
  0x51   : > { %293 = vrot.lane.b32.xlu0 %v1383_v5, %s1249_s11 }
  0x52   : > { %1118 = vset.pattern.permute.xlu0 %v1250_v10 }
  0x53   : > { %276 = vrot.lane.b32.xlu1 %v1383_v5, %s1248_s10 }
  0x55   : > { %308 = vrot.lane.b32.xlu0 %v1379_v3, %s1251_s12 }
  0x57   : > { %407 = vperm.xlu1 %1116, %v217_v2  }
  0x59   : > { %423 = vperm.xlu0 %1118, %v217_v2  }
  0x5b   : > { %291 = vrot.lane.b32.xlu1 %v1379_v3, %s1249_s11 }
  0x5c   : > { %1117 = vset.pattern.permute.xlu1 %v1252_v11 }
  0x5d   : > { %342 = vrot.lane.b32.xlu0 %v1379_v3, %s1253_s13 }
  0x5e   : > { %1119 = vset.pattern.permute.xlu0 %v1254_v12 }
  0x5f   : > { %415 = vperm.xlu1 %1117, %v217_v2  }
  0x61   : > { %431 = vperm.xlu0 %1119, %v217_v2  }
  0x63   : > { %310 = vrot.lane.b32.xlu1 %v1383_v5, %s1251_s12 }
  0x64   : > { %1120 = vset.pattern.permute.xlu1 %v1250_v10 }
  0x65   : > { %1122 = vset.pattern.permute.xlu0 %v1240_v4 }
  0x66   : > { %593 = vperm.xlu0 %1122, %v218_v13  }
  0x67   : > { %325 = vrot.lane.b32.xlu1 %v1379_v3, %s1255_s22 }
  0x6a   : > { %672 = vperm.xlu0 %1122, %v1420_v14  }
  0x6b   : > { %327 = vrot.lane.b32.xlu1 %v1383_v5, %s1255_s22 }
  0x6e   : > { %1127 = vset.pattern.permute.xlu0 %v1246_v8 }
  0x6f   : > { %344 = vrot.lane.b32.xlu1 %v1383_v5, %s1253_s13  ;;  %617 = vperm.xlu0 %1127, %v218_v13  }
  0x73   : > { %514 = vperm.xlu1 %1120, %v1430_v15   ;;  %696 = vperm.xlu0 %1127, %v1420_v14  }
  0x77   : > { %1121 = vset.pattern.permute.xlu1 %v1239_v1  ;;  %1132 = vset.pattern.permute.xlu0 %v1247_v9 }
  0x78   : > { %587 = vperm.xlu1 %1121, %v218_v13   ;;  %704 = vperm.xlu0 %1132, %v1420_v14  }
  0x7c   : > { %1123 = vset.pattern.permute.xlu1 %v1238_v0  ;;  %1133 = vset.pattern.permute.xlu0 %v1252_v11  ;;  %v317_v11 = vsub.s32 6, %v1455_v29 }
  0x7d   : > { %601 = vperm.xlu1 %1123, %v218_v13   ;;  %641 = vperm.xlu0 %1133, %v218_v13  }
  0x7e   : > { %v1568_v32 = vrot.slane %v1465_v36, %v317_v11 }
  0x81   : > { %1124 = vset.pattern.permute.xlu1 %v1244_v7  ;;  %720 = vperm.xlu0 %1133, %v1420_v14  }
  0x82   : > { %609 = vperm.xlu1 %1124, %v218_v13  }
  0x85   : > { %1136 = vset.pattern.permute.xlu0 %v1250_v10 }
  0x86   : > { %1125 = vset.pattern.permute.xlu1 %v1247_v9 }
  0x87   : > { %625 = vperm.xlu1 %1125, %v218_v13  }
  0x8b   : > { %1126 = vset.pattern.permute.xlu1 %v1239_v1  ;;  %v300_v1 = vsub.s32 5, %v1455_v29 }
  0x8c   : > { %666 = vperm.xlu1 %1126, %v1420_v14  }
  0x90   : > { %1128 = vset.pattern.permute.xlu1 %v1242_v6 }
  0x91   : > { %633 = vperm.xlu1 %1128, %v218_v13  }
  0x95   : > { %1129 = vset.pattern.permute.xlu1 %v1238_v0 }
  0x96   : > { %680 = vperm.xlu1 %1129, %v1420_v14  }
  0x9a   : > { %1130 = vset.pattern.permute.xlu1 %v1244_v7 }
  0x9b   : > { %688 = vperm.xlu1 %1130, %v1420_v14  }
  0x9f   : > { %1131 = vset.pattern.permute.xlu1 %v1250_v10 }
  0xa0   : > { %649 = vperm.xlu1 %1131, %v218_v13  }
  0xa4   : > { %1134 = vset.pattern.permute.xlu1 %v1254_v12 }
  0xa5   : > { %657 = vperm.xlu1 %1134, %v218_v13  }
  0xa9   : > { %1135 = vset.pattern.permute.xlu1 %v1242_v6 }
  0xaa   : > { %712 = vperm.xlu1 %1135, %v1420_v14  }
  0xb5   : > { %v1451_v17 = vpop.permute.xlu1 %375  ;;  %v362_v18 = vpop.permute.xlu0 %361 }
  0xb9   : > { %v222_v19 = vpop.permute.xlu1 %221 }
  0xba   : > { %v368_v20 = vpop.permute.xlu0 %367 }
  0xbd   : > { %v224_v21 = vpop.permute.xlu1 %223 }
  0xbe   : > { %v241_v23 = vpop.permute.xlu0 %240  ;;  %v228_v48 = vsel %vm227_vm1, %v222_v19, %v224_v21  ;;  %v229_v49 = vsel %vm227_vm1, %v224_v21, %v222_v19 }
  0xbf   : > { %v1520_v58 = vmul.f32 %v1487_v45, %v229_v49  ;;  %v1523_v59 = vmul.f32 %v1490_v46, %v228_v48 }
  0xc1   : > { %v243_v22 = vpop.permute.xlu1 %242  ;;  %v364_v9 = vmul.f32 %v362_v18, %v1520_v58  ;;  %v365_v10 = vmul.f32 %v362_v18, %v1523_v59 }
  0xc2   : > { %v1453_v25 = vpop.permute.xlu0 %383  ;;  %v245_v42 = vsel %vm244_vm0, %v241_v23, %v243_v22  ;;  %v246_v43 = vsel %vm244_vm0, %v243_v22, %v241_v23 }
  0xc3   : > { %v1504_v51 = vmul.f32 %v1471_v38, %v246_v43  ;;  %v1507_v52 = vmul.f32 %v1474_v39, %v245_v42 }
  0xc5   : > { %v258_v24 = vpop.permute.xlu1 %257  ;;  %v370_v2 = vmul.f32 %v368_v20, %v1504_v51  ;;  %v371_v4 = vmul.f32 %v368_v20, %v1507_v52  ;;  %v1553_v20 = vrot.slane %v1465_v36, %v300_v1 }
  0xc7   : > { %v1457_v30 = vpop.permute.xlu0 %391  ;;  %v372_v21 = vadd.f32 %v370_v2, %v364_v9  ;;  %v373_v22 = vadd.f32 %v371_v4, %v365_v10  ;;  %v1599_v2 = vrot.slane %v1467_v37, %v334_v34 }
  0xc8   : > { %v394_v29 = vmul.f32 %v1457_v30, %v1379_v3 }
  0xc9   : > { %v260_v26 = vpop.permute.xlu1 %259 }
  0xca   : > { %v262_v53 = vsel %vm261_vm2, %v258_v24, %v260_v26  ;;  %v263_v54 = vsel %vm261_vm2, %v260_v26, %v258_v24  ;;  %v1556_v24 = vrot.slane %v1467_v37, %v300_v1  ;;  %v1596_v1 = vrot.slane %v1465_v36, %v334_v34 }
  0xcb   : > { %v1530_v63 = vmul.f32 %v1493_v47, %v263_v54  ;;  %v1533_v0 = vmul.f32 %v1500_v50, %v262_v53  ;;  %v395_v53 = vmul.f32 %v1457_v30, %v1383_v5 }
  0xcc   : > { %v1476_v40 = vpop.permute.xlu0 %399 }
  0xcd   : > { %v275_v28 = vpop.permute.xlu1 %274  ;;  %v378_v13 = vmul.f32 %v1451_v17, %v1530_v63  ;;  %v379_v19 = vmul.f32 %v1451_v17, %v1533_v0 }
  0xcf   : > { %v380_v35 = vadd.f32 %v378_v13, %v372_v21  ;;  %v381_v42 = vadd.f32 %v379_v19, %v373_v22  ;;  %v1620_v22 = vld [vmem:[#allocation2 + $0x10] ss:$0 sm:$0xff] }
  0xd0   : > { %v294_v60 = vpop.permute.xlu0 %293 }
  0xd1   : > { %v277_v33 = vpop.permute.xlu1 %276 }
  0xd2   : > { %v279_v61 = vsel %vm278_vm3, %v275_v28, %v277_v33  ;;  %v280_v62 = vsel %vm278_vm3, %v277_v33, %v275_v28  ;;  %v1571_v33 = vrot.slane %v1467_v37, %v317_v11 }
  0xd3   : > { %v1539_v7 = vmul.f32 %v1514_v56, %v280_v62  ;;  %v1542_v8 = vmul.f32 %v1517_v57, %v279_v61 }
  0xd4   : > { %v309_v23 = vpop.permute.xlu0 %308 }
  0xd5   : > { %v386_v26 = vmul.f32 %v1453_v25, %v1539_v7  ;;  %v387_v27 = vmul.f32 %v1453_v25, %v1542_v8 }
  0xd6   : > { %v1478_v41 = vpop.permute.xlu1 %407 }
  0xd7   : > { %v388_v54 = vadd.f32 %v386_v26, %v380_v35 }
  0xd9   : > { %v396_v10 = vadd.f32 %v394_v29, %v388_v54 }
  0xda   : > { %v292_v55 = vpop.permute.xlu1 %291 }
  0xdb   : > { %v296_v17 = vsel %vm295_vm4, %v292_v55, %v294_v60  ;;  %v297_v28 = vsel %vm295_vm4, %v294_v60, %v292_v55  ;;  %v389_v55 = vadd.f32 %v387_v27, %v381_v42  ;;  %v424_v60 = vpop.permute.xlu0 %423 }
  0xdc   : > { %v1579_v44 = vmul.f32 %v1553_v20, %v296_v17  ;;  %v1582_v48 = vmul.f32 %v1556_v24, %v297_v28 }
  0xdd   : > { %v397_v11 = vadd.f32 %v395_v53, %v389_v55 }
  0xde   : > { %v416_v6 = vpop.permute.xlu1 %415  ;;  %v402_v4 = vmul.f32 %v1476_v40, %v1579_v44  ;;  %v403_v30 = vmul.f32 %v1476_v40, %v1582_v48 }
  0xdf   : > { %v343_v27 = vpop.permute.xlu0 %342 }
  0xe0   : > { %v405_v26 = vadd.f32 %v403_v30, %v397_v11 }
  0xe2   : > { %v311_v18 = vpop.permute.xlu1 %310 }
  0xe3   : > { %v313_v43 = vsel %vm312_vm5, %v309_v23, %v311_v18  ;;  %v314_v25 = vsel %vm312_vm5, %v311_v18, %v309_v23  ;;  %v1622_v23 = vld [vmem:[#allocation2 + $0x18] ss:$0 sm:$0xff]  ;;  %v404_v18 = vadd.f32 %v402_v4, %v396_v10 }
  0xe4   : > { %v1590_v61 = vmul.f32 %v1568_v32, %v313_v43  ;;  %v1593_v62 = vmul.f32 %v1571_v33, %v314_v25 }
  0xe6   : > { %v326_v49 = vpop.permute.xlu1 %325  ;;  %v410_v37 = vmul.f32 %v1478_v41, %v1590_v61  ;;  %v411_v19 = vmul.f32 %v1478_v41, %v1593_v62 }
  0xe8   : > { %v412_v42 = vadd.f32 %v410_v37, %v404_v18 }
  0xea   : > { %v328_v9 = vpop.permute.xlu1 %327 }
  0xeb   : > { %v330_v13 = vsel %vm329_vm6, %v326_v49, %v328_v9  ;;  %v331_v36 = vsel %vm329_vm6, %v328_v9, %v326_v49  ;;  %v413_v49 = vadd.f32 %v411_v19, %v405_v26  ;;  %v432_v9 = vpop.permute.xlu0 %431 }
  0xec   : > { %v1615_v21 = vmul.f32 %v1596_v1, %v330_v13  ;;  %v1618_v40 = vmul.f32 %v1599_v2, %v331_v36 }
  0xee   : > { %v418_v17 = vmul.f32 %v416_v6, %v1615_v21  ;;  %v419_v28 = vmul.f32 %v416_v6, %v1618_v40  ;;  %v345_v34 = vpop.permute.xlu1 %344 }
  0xef   : > { %v347_v41 = vsel %vm346_vm7, %v343_v27, %v345_v34  ;;  %v348_v35 = vsel %vm346_vm7, %v345_v34, %v343_v27  ;;  %v594_v19 = vpop.permute.xlu0 %593 }
  0xf0   : > { %v357_v43 = vmul.f32 %v1620_v22, %v347_v41  ;;  %v358_v25 = vmul.f32 %v1622_v23, %v348_v35  ;;  %v421_v54 = vadd.f32 %v419_v28, %v413_v49  ;;  %v420_v4 = vadd.f32 %v418_v17, %v412_v42 }
  0xf1   : > { %v596_v35 = vmul.f32 %v594_v19, %v1504_v51  ;;  %v597_v42 = vmul.f32 %v594_v19, %v1507_v52 }
  0xf2   : > { %v426_v29 = vmul.f32 %v424_v60, %v357_v43  ;;  %v1632_v53 = vpop.permute.xlu1 %514  ;;  %v427_v55 = vmul.f32 %v424_v60, %v358_v25 }
  0xf3   : > { %v1636_v26 = vpop.permute.xlu0 %672 }
  0xf4   : > { %v429_v6 = vadd.f32 %v427_v55, %v421_v54  ;;  %v428_v30 = vadd.f32 %v426_v29, %v420_v4 }
  0xf6   : > { %v435_v10 = vadd.f32 %v432_v9, %v429_v6  ;;  %v434_v11 = vadd.f32 %v432_v9, %v428_v30 }
  0xf7   : > { %v588_v13 = vpop.permute.xlu1 %587  ;;  %v618_v17 = vpop.permute.xlu0 %617 }
  0xf8   : > { %v437_v36 = vmax.f32 %v435_v10, 0.0  ;;  %v436_v27 = vmax.f32 %v434_v11, 0.0  ;;  %v590_v28 = vmul.f32 %v588_v13, %v1520_v58  ;;  %v591_v34 = vmul.f32 %v588_v13, %v1523_v59 }
  0xf9   : > { %v620_v10 = vmul.f32 %v618_v17, %v1379_v3  ;;  %v621_v51 = vmul.f32 %v618_v17, %v1383_v5 }
  0xfa   : > { %442 = vmatprep.subr.mxu0 %v437_v36  ;;  %v598_v54 = vadd.f32 %v596_v35, %v590_v28  ;;  %v599_v55 = vadd.f32 %v597_v42, %v591_v34 }
  0xfb   : > { %443 = vmatpush1.msra.mxu0 %v436_v27  ;;  %v1648_v30 = vpop.permute.xlu0 %696 }
  0xfc   : > { %1022 = vmatmul.mubr.msk.f32.vlgmr.msra.gmra.mrb[0].mxu0 %vm438_vm8, %v1430_v15  ;;  %v602_v37 = vpop.permute.xlu1 %601 }
  0xfd   : > { %v604_v49 = vmul.f32 %v602_v37, %v1530_v63  ;;  %v605_v29 = vmul.f32 %v602_v37, %v1533_v0 }
  0xff   : > { %v606_v58 = vadd.f32 %v604_v49, %v598_v54  ;;  %v607_v59 = vadd.f32 %v605_v29, %v599_v55  ;;  %v1652_v63 = vpop.permute.xlu0 %704 }
 0x101   : > { %v610_v18 = vpop.permute.xlu1 %609 }
 0x102   : > { %v612_v4 = vmul.f32 %v610_v18, %v1539_v7  ;;  %v613_v6 = vmul.f32 %v610_v18, %v1542_v8 }
 0x103   : > { %v642_v17 = vpop.permute.xlu0 %641 }
 0x104   : > { %v614_v52 = vadd.f32 %v612_v4, %v606_v58  ;;  %v615_v11 = vadd.f32 %v613_v6, %v607_v59  ;;  %v644_v42 = vmul.f32 %v642_v17, %v1615_v21  ;;  %v645_v49 = vmul.f32 %v642_v17, %v1618_v40 }
 0x106   : > { %v626_v60 = vpop.permute.xlu1 %625  ;;  %v622_v13 = vadd.f32 %v620_v10, %v614_v52  ;;  %v623_v36 = vadd.f32 %v621_v51, %v615_v11 }
 0x107   : > { %v628_v7 = vmul.f32 %v626_v60, %v1579_v44  ;;  %v629_v8 = vmul.f32 %v626_v60, %v1582_v48 }
 0x109   : > { %v630_v19 = vadd.f32 %v628_v7, %v622_v13  ;;  %v631_v18 = vadd.f32 %v629_v8, %v623_v36 }
 0x10b   : > { %v1640_v41 = vpop.permute.xlu1 %666 }
 0x110   : > { %v634_v9 = vpop.permute.xlu1 %633 }
 0x111   : > { %v636_v27 = vmul.f32 %v634_v9, %v1590_v61  ;;  %v637_v37 = vmul.f32 %v634_v9, %v1593_v62 }
 0x113   : > { %v638_v34 = vadd.f32 %v636_v27, %v630_v19  ;;  %v639_v35 = vadd.f32 %v637_v37, %v631_v18 }
 0x115   : > { %v1654_v0 = vpop.permute.xlu1 %680  ;;  %v646_v55 = vadd.f32 %v644_v42, %v638_v34  ;;  %v647_v48 = vadd.f32 %v645_v49, %v639_v35 }
 0x11a   : > { %v1660_v28 = vpop.permute.xlu1 %688 }
 0x11f   : > { %v650_v29 = vpop.permute.xlu1 %649 }
 0x120   : > { %v652_v54 = vmul.f32 %v650_v29, %v357_v43  ;;  %v653_v44 = vmul.f32 %v650_v29, %v358_v25  ;;  %v1257_v25 = vmov 21  }
 0x122   : > { %v654_v60 = vadd.f32 %v652_v54, %v646_v55  ;;  %v655_v61 = vadd.f32 %v653_v44, %v647_v48 }
 0x124   : > { %v658_v4 = vpop.permute.xlu1 %657 }
 0x125   : > { %v660_v62 = vadd.f32 %v658_v4, %v654_v60  ;;  %v661_v6 = vadd.f32 %v658_v4, %v655_v61 }
 0x127   : > { %v663_v58 = vmax.f32 %v661_v6, 0.0  ;;  %v662_v59 = vmax.f32 %v660_v62, 0.0 }
 0x129   : > { %747 = vmatprep.subr.mxu1 %v663_v58 }
 0x12a   : > { %748 = vmatpush1.msra.mxu1 %v662_v59 }
 0x1cf   : > { %v508_v9 = vpop.f32.mrb[0].mxu0 }
 0x1d0   : > { %v517_v10 = vadd.f32 %v1632_v53, %v508_v9  ;;  %v510_v21 = vpop.f32.mrb[1].mxu0 }
 0x1d1   : > { %v518_v40 = vadd.f32 %v1632_v53, %v510_v21 }
 0x1d2   : > { %v1665_v51 = vmax.f32 %v517_v10, 0.0 }
 0x1d3   : > { %v1680_v43 = vmax.f32 %v518_v40, 0.0 }
 0x1d4   : > { %537 = vrot.lane.b32.xlu1 %v1665_v51, %s1245_s9  ;;  %521 = vrot.lane.b32.xlu0 %v1665_v51, %s1241_s7 }
 0x1d8   : > { %545 = vrot.lane.b32.xlu1 %v1665_v51, %s1248_s10  ;;  %529 = vrot.lane.b32.xlu0 %v1665_v51, %s1243_s8 }
 0x1dc   : > { %561 = vrot.lane.b32.xlu1 %v1665_v51, %s1251_s12  ;;  %553 = vrot.lane.b32.xlu0 %v1665_v51, %s1249_s11 }
 0x1e0   : > { %523 = vrot.lane.b32.xlu1 %v1680_v43, %s1241_s7  ;;  %539 = vrot.lane.b32.xlu0 %v1680_v43, %s1245_s9  ;;  %s1710_s7 = scalar_lea.vmem [#allocation5], %s1017_s5 }
 0x1e1   : > { %919 = vst [vmem:[%s1710_s7] sm:$0xff] %v1379_v3  ;;  %920 = vst [vmem:[%s1710_s7 + $0x8] sm:$0xff] %v1383_v5  ;;  %s937_s9 = sshll.u32 %s1710_s7, 4  ;;  %s1794_s9 = int_to_ptr.vmem [resolvable:$true] %s937_s9 }
 0x1e2   : > { %s1167_s14 = scalar_lea.vmem %s1794_s9, 512 }
 0x1e3   : > { %p1168_p6 = scmp.ne.s32.totalorder %s1794_s9, %s1167_s14 }
 0x1e4   : > { %531 = vrot.lane.b32.xlu1 %v1680_v43, %s1243_s8  ;;  %728 = vperm.xlu0 %1136, %v1420_v14  }
 0x1e5   : > { %p1169_p10 = pnand %p1168_p6, %p1866_p9 }
 0x1e7   : > { %p1170_p12 = pneg %p1169_p10 }
 0x1e8   : > { %569 = vrot.lane.b32.xlu1 %v1665_v51, %s1255_s22  ;;  %577 = vrot.lane.b32.xlu0 %v1665_v51, %s1253_s13 }
 0x1e9   : > { %1137 = vset.pattern.permute.xlu0 %v1254_v12  ;;  %v1718_v12 = vpop.permute.xlu0 %720 }
 0x1ec   : > { %547 = vrot.lane.b32.xlu1 %v1680_v43, %s1248_s10  ;;  %736 = vperm.xlu0 %1137, %v1420_v14   ;;  %v1720_v14 = vpop.permute.xlu1 %712  ;;  %s1033_s10 = sshll.u32 %s1307_s19, 9  ;;  %s1809_s19 = scalar_lea.sflag [#allocation4], %s203_s30 }
 0x1f0   : > { %555 = vrot.lane.b32.xlu1 %v1680_v43, %s1249_s11  ;;  %1138 = vset.pattern.permute.xlu0 %v1257_v25 }
 0x1f1   : > { %904 = vperm.xlu0 %1138, %v1430_v15  }
 0x1f4   : > { %563 = vrot.lane.b32.xlu1 %v1680_v43, %s1251_s12 }
 0x1f8   : > { %571 = vrot.lane.b32.xlu1 %v1680_v43, %s1255_s22  ;;  %s1171_s22 = sshll.u32 %s1259_s20, 4  ;;  %s1172_s22 = int_to_ptr.vmem [resolvable:$false] %s1171_s22 }
 0x1f9   : > { %s1173_s23 = scalar_lea.vmem %s1172_s22, 1024  ;;  %p1174_p2 = scmp.lt.s32.totalorder %s1794_s9, %s1172_s22 }
 0x1fa   : > { %p1175_p3 = scmp.lt.s32.totalorder %s1173_s23, %s1167_s14 }
 0x1fc   : > { %579 = vrot.lane.b32.xlu1 %v1680_v43, %s1253_s13  ;;  %p1176_p4 = por %p1175_p3, %p1174_p2 }
 0x1fe   : > { %p1177_p7 = pnand %p1176_p4, %p1170_p12 }
 0x200   : > { %743 = vrot.lane.b32.xlu1 %v1430_v15, %s1258_s6 }
 0x204   : > { %818 = vrot.lane.b32.xlu1 %v1430_v15, %s1253_s13  ;;  %s1801_s13 = scalar_lea.hbm %s1855_s4, %s1033_s10 }
 0x246   : > { %v522_v53 = vpop.permute.xlu0 %521  ;;  %v538_v52 = vpop.permute.xlu1 %537 }
 0x24a   : > { %v546_v11 = vpop.permute.xlu1 %545  ;;  %v530_v13 = vpop.permute.xlu0 %529 }
 0x24e   : > { %v562_v36 = vpop.permute.xlu1 %561  ;;  %v554_v7 = vpop.permute.xlu0 %553 }
 0x252   : > { %v524_v8 = vpop.permute.xlu1 %523  ;;  %v540_v19 = vpop.permute.xlu0 %539 }
 0x253   : > { %v525_v3 = vsel %vm227_vm1, %v522_v53, %v524_v8  ;;  %v526_v5 = vsel %vm227_vm1, %v524_v8, %v522_v53  ;;  %v541_v49 = vsel %vm261_vm2, %v538_v52, %v540_v19  ;;  %v542_v29 = vsel %vm261_vm2, %v540_v19, %v538_v52 }
 0x254   : > { %v527_v34 = vmul.f32 %v526_v5, %v1487_v45  ;;  %v528_v35 = vmul.f32 %v525_v3, %v1490_v46  ;;  %v543_v55 = vmul.f32 %v542_v29, %v1493_v47  ;;  %v699_v52 = vmul.f32 %v1648_v30, %v1665_v51 }
 0x256   : > { %v532_v27 = vpop.permute.xlu1 %531  ;;  %v670_v45 = vmul.f32 %v1640_v41, %v528_v35  ;;  %v683_v47 = vmul.f32 %v1654_v0, %v543_v55 }
 0x257   : > { %v533_v15 = vsel %vm244_vm0, %v530_v13, %v532_v27  ;;  %v534_v37 = vsel %vm244_vm0, %v532_v27, %v530_v13 }
 0x258   : > { %v535_v18 = vmul.f32 %v534_v37, %v1471_v38  ;;  %v536_v17 = vmul.f32 %v533_v15, %v1474_v39  ;;  %v544_v38 = vmul.f32 %v541_v49, %v1500_v50  ;;  %v669_v39 = vmul.f32 %v1640_v41, %v527_v34 }
 0x25a   : > { %v570_v42 = vpop.permute.xlu1 %569  ;;  %v675_v54 = vmul.f32 %v1636_v26, %v535_v18  ;;  %v676_v44 = vmul.f32 %v1636_v26, %v536_v17  ;;  %v684_v50 = vmul.f32 %v1654_v0, %v544_v38 }
 0x25c   : > { %v677_v61 = vadd.f32 %v675_v54, %v669_v39  ;;  %v678_v4 = vadd.f32 %v676_v44, %v670_v45 }
 0x25e   : > { %v548_v46 = vpop.permute.xlu1 %547  ;;  %v685_v10 = vadd.f32 %v683_v47, %v677_v61  ;;  %v686_v21 = vadd.f32 %v684_v50, %v678_v4 }
 0x25f   : > { %v549_v48 = vsel %vm278_vm3, %v546_v11, %v548_v46  ;;  %v550_v60 = vsel %vm278_vm3, %v548_v46, %v546_v11  ;;  %v700_v11 = vmul.f32 %v1648_v30, %v1680_v43 }
 0x260   : > { %v551_v62 = vmul.f32 %v550_v60, %v1514_v56  ;;  %v552_v26 = vmul.f32 %v549_v48, %v1517_v57 }
 0x262   : > { %v691_v6 = vmul.f32 %v1660_v28, %v551_v62  ;;  %v692_v41 = vmul.f32 %v1660_v28, %v552_v26  ;;  %v556_v58 = vpop.permute.xlu1 %555 }
 0x263   : > { %v557_v59 = vsel %vm295_vm4, %v554_v7, %v556_v58  ;;  %v558_v9 = vsel %vm295_vm4, %v556_v58, %v554_v7  ;;  %v729_v13 = vpop.permute.xlu0 %728 }
 0x264   : > { %v693_v56 = vadd.f32 %v691_v6, %v685_v10  ;;  %v694_v40 = vadd.f32 %v692_v41, %v686_v21  ;;  %v559_v57 = vmul.f32 %v557_v59, %v1553_v20  ;;  %v560_v25 = vmul.f32 %v558_v9, %v1556_v24 }
 0x266   : > { %v564_v0 = vpop.permute.xlu1 %563  ;;  %v701_v8 = vadd.f32 %v699_v52, %v693_v56  ;;  %v702_v24 = vadd.f32 %v700_v11, %v694_v40  ;;  %v707_v27 = vmul.f32 %v1652_v63, %v559_v57  ;;  %v708_v3 = vmul.f32 %v1652_v63, %v560_v25 }
 0x267   : > { %v565_v53 = vsel %vm312_vm5, %v562_v36, %v564_v0  ;;  %v566_v28 = vsel %vm312_vm5, %v564_v0, %v562_v36  ;;  %v578_v17 = vpop.permute.xlu0 %577 }
 0x268   : > { %v567_v7 = vmul.f32 %v565_v53, %v1568_v32  ;;  %v568_v20 = vmul.f32 %v566_v28, %v1571_v33  ;;  %v709_v19 = vadd.f32 %v707_v27, %v701_v8  ;;  %v710_v18 = vadd.f32 %v708_v3, %v702_v24 }
 0x26a   : > { %v572_v5 = vpop.permute.xlu1 %571  ;;  %v715_v30 = vmul.f32 %v1720_v14, %v567_v7  ;;  %v716_v37 = vmul.f32 %v1720_v14, %v568_v20 }
 0x26b   : > { %v573_v36 = vsel %vm329_vm6, %v570_v42, %v572_v5  ;;  %v574_v15 = vsel %vm329_vm6, %v572_v5, %v570_v42 }
 0x26c   : > { %v575_v32 = vmul.f32 %v573_v36, %v1596_v1  ;;  %v576_v33 = vmul.f32 %v574_v15, %v1599_v2  ;;  %v717_v29 = vadd.f32 %v715_v30, %v709_v19  ;;  %v718_v14 = vadd.f32 %v716_v37, %v710_v18 }
 0x26e   : > { %v723_v63 = vmul.f32 %v1718_v12, %v575_v32  ;;  %v724_v34 = vmul.f32 %v1718_v12, %v576_v33  ;;  %v580_v35 = vpop.permute.xlu1 %579  ;;  %v737_v12 = vpop.permute.xlu0 %736 }
 0x26f   : > { %v581_v49 = vsel %vm346_vm7, %v578_v17, %v580_v35  ;;  %v582_v42 = vsel %vm346_vm7, %v580_v35, %v578_v17 }
 0x270   : > { %v583_v1 = vmul.f32 %v1620_v22, %v581_v49  ;;  %v584_v2 = vmul.f32 %v1622_v23, %v582_v42  ;;  %v725_v38 = vadd.f32 %v723_v63, %v717_v29  ;;  %v726_v39 = vadd.f32 %v724_v34, %v718_v14 }
 0x272   : > { %v731_v54 = vmul.f32 %v729_v13, %v583_v1  ;;  %v732_v44 = vmul.f32 %v729_v13, %v584_v2  ;;  %v744_v55 = vpop.permute.xlu1 %743  ;;  %v905_v61 = vpop.permute.xlu0 %904 }
 0x273   : > { %1023 = vmatmul.mubr.msk.f32.vlgmr.msra.gmra.mrb[0].mxu1 %vm438_vm8, %v744_v55 }
 0x274   : > { %v733_v45 = vadd.f32 %v731_v54, %v725_v38  ;;  %v734_v46 = vadd.f32 %v732_v44, %v726_v39  ;;  %894 = vmatprep.mubr.f32.mxu1 %v1256_v16 }
 0x276   : > { %v739_v31 = vadd.f32 %v737_v12, %v733_v45  ;;  %v740_v48 = vadd.f32 %v737_v12, %v734_v46  ;;  %v819_v23 = vpop.permute.xlu1 %818 }
 0x278   : > { %v741_v22 = vmax.f32 %v739_v31, 0.0  ;;  %v742_v60 = vmax.f32 %v740_v48, 0.0 }
 0x27a   : > { %1024 = vmatprep.subr.msk.mxu1 %vm823_vm9, %v742_v60 }
 0x27b   : > { %1025 = vmatpush1.msk.msra.mxu1 %vm823_vm9, %v741_v22 }
 0x27c   : > { %1026 = vmatmul.mubr.msk.f32.vlgmr.msra.gmra.mrb[0].mxu1 %vm820_vm10, %v819_v23 }
 0x34f   : > { %v896_v4 = vpop.f32.mrb[0].mxu1 }
 0x350   : > { %v907_v16 = vadd.f32 %v905_v61, %v896_v4  ;;  %v898_v62 = vpop.f32.mrb[1].mxu1 }
 0x351   : > { %v908_v26 = vadd.f32 %v905_v61, %v898_v62 }
 0x352   : > { %v909_v47 = vmax.f32 %v907_v16, 0.0 }
 0x353   : > { %v910_v50 = vmax.f32 %v908_v26, 0.0 }
 0x354   : > { %v913_v6 = vrot.slane %v909_v47, 4 }
 0x355   : > { %v914_v41 = vrot.slane %v910_v50, 4 }
 0x356   : > { %v917_v58 = vsel %vm823_vm9, %v1665_v51, %v913_v6 }
 0x357   : > { %921 = vst [vmem:[%s1710_s7 + $0x10] sm:$0xff] %v917_v58  ;;  %v918_v59 = vsel %vm823_vm9, %v1680_v43, %v914_v41 }
 0x358   : > { %922 = vst [vmem:[%s1710_s7 + $0x18] sm:$0xff] %v918_v59 }
 0x359   : > { %1180 = shalt.err (!%p1177_p7)
}
 0x35a   : > { %s1181_s28 = scalar_lea.hbm %s1801_s13, 512  ;;  %s1185_s30 = scalar_lea.hbm %s1855_s4, 1024 }
 0x35b   : > { %p1182_p8 = scmp.ne.s32.totalorder %s1801_s13, %s1181_s28  ;;  %p1186_p1 = scmp.lt.u32.totalorder %s1801_s13, %s1855_s4 }
 0x35c   : > { %p1187_p0 = scmp.lt.u32.totalorder %s1185_s30, %s1181_s28  ;;  %p1189_p6 = scmp.lt.u32.totalorder %s1181_s28, %s1801_s13 }
 0x35d   : > { %p1183_p11 = pnand %p1182_p8, %p1866_p9 }
 0x35e   : > { %p1188_p5 = por %p1187_p0, %p1186_p1 }
 0x35f   : > { %p1184_p13 = pneg %p1183_p11 }
 0x360   : > { %p1190_p10 = por %p1189_p6, %p1188_p5 }
 0x362   : > { %p1191_p12 = pnand %p1190_p10, %p1184_p13 }
 0x364   : > { %1194 = shalt.err (!%p1191_p12)
}
 0x365   : > { %s1260_s7 = smov 256  }
 0x366   : > { %1040 = dma.vmem_to_hbm [thread:$0]  (%p1866_p9), %s1794_s9, 512, %s1801_s13, %s1809_s19, %s1260_s7, %s1260_s7, %s1243_s8  }
 0x367 PF: > { %p1052_p2 = scmp.ge.s32.totalorder %s1233_s18, 2  ;;  %s952_s10 = sand.u32 1, %s1221_s15  }
 0x368   : > { %p1867_p3 = scmp.ne.s32.totalorder %s1860_s26, 0  ;;  %s953_s11 = scalar_lea.sflag [#allocation4], %s952_s10 }
 0x36a   : > { %p1047_p4 = pnand %p1052_p2, %p1867_p3 }
 0x36c   : > { %1216 = dma.done.wait (!%p1047_p4), %s953_s11, 512  }
 0x36d   : > { %1218 = vsyncadd (!%p1047_p4), %s953_s11, 4294966784  ;;  %p15_p7 = scmp.ge.s32.totalorder %s1311_s21, 4   ;;  %s1868_s15 = smov %s1225_s16 }
 0x36e   : > { %s1869_s16 = smov %s1229_s17  ;;  %s1870_s17 = smov %s1322_s24 }
 0x36f   : > { %s1871_s18 = smov %s1311_s21  ;;  %17 = sbr.rel (!%p15_p7) target bundleno = 4 (0x4), region = 76 }
 0x376   :  { %958 = vsyncpa [#allocation3], 1 }
 0x377   :  { %960 = vsyncpa [#allocation3 + $0x1], 1 }
 0x378   :  { %961 = vsyncpa [#allocation4], 1 }
 0x379   :  { %963 = vsyncpa [#allocation4 + $0x1], 1 }

</bundles_post_ra>
